<compile_context>
chip_gen: v7x
topology: tpu7x:2x2x1
jax: 0.10.0
libtpu: 0.0.40
codegen_flags: <defaults>
</compile_context>

<pallas_src>
import math

import jax
import jax.numpy as jnp
import numpy as np
from jax.experimental import pallas as pl
from jax.experimental.pallas import tpu as pltpu


def _rsr_kernel(el_ref, er_ref, relb_ref, nfeat_ref, out_ref):
    # el_ref   : [1, Np]   lane-dense source projections (all src nodes)
    # er_ref   : [tn, 1]   destination projections for this dst tile
    # relb_ref : [tn, Np]  pre-masked relation bias (-1e30 == no edge / padding)
    # nfeat_ref: [Np, Fp]  all source node features, bf16
    relb = relb_ref[...]
    mask = relb > -1e29                                   # edge exists
    logits = er_ref[...] + el_ref[...] + relb             # VPU broadcast adds
    m = jnp.max(logits, axis=-1, keepdims=True)           # [tn, 1]
    p = jnp.where(mask, jnp.exp(logits - m), 0.0)         # [tn, Np]
    denom = jnp.sum(p, axis=-1, keepdims=True)            # [tn, 1]

    # Unnormalized aggregation: bf16 operands, f32 accumulation on the MXU.
    o = jnp.dot(p.astype(jnp.bfloat16), nfeat_ref[...],
                preferred_element_type=jnp.float32)       # [tn, Fp]

    # Normalize after the matmul (F ops/row instead of N), reciprocal on EUP.
    inv = pl.reciprocal(jnp.maximum(denom, 1e-30), approx=True)
    out_ref[...] = (o * inv).astype(out_ref.dtype)


def _round_up(x, m):
    return (x + m - 1) // m * m


def rsr_conv(nfeat, adj, rel_bias, w_head, b_head, w_tail, b_tail, *, tn=128):
    """nfeat [N, F]; adj, rel_bias [N_dst, N_src]; returns [N, F] float32."""
    N, F = nfeat.shape
    assert tn % 8 == 0
    # Np must be a multiple of both tn (dst tiling) and 128 (lane dim of relb/el).
    step = tn * 128 // math.gcd(tn, 128)
    Np = _round_up(N, step)
    Fp = _round_up(F, 128)

    nfeat = nfeat.astype(jnp.float32)

    # Hoisted 1-lane projections (done once, outside the grid loop).
    el = (nfeat @ w_head.T + b_head).reshape(1, N)         # [1, N]
    er = (nfeat @ w_tail.T + b_tail).reshape(N, 1)         # [N, 1]

    # Fold adjacency into the relation bias: -1e30 sentinel == "no edge".
    relb = jnp.where(adj > 0.0, rel_bias, -1e30).astype(jnp.float32)

    # Pad to MXU / lane-friendly shapes.
    el_p = jnp.zeros((1, Np), jnp.float32).at[:, :N].set(el)
    er_p = jnp.zeros((Np, 1), jnp.float32).at[:N, :].set(er)
    relb_p = jnp.full((Np, Np), -1e30, jnp.float32).at[:N, :N].set(relb)
    nfeat_p = (jnp.zeros((Np, Fp), jnp.float32).at[:N, :F].set(nfeat)
               .astype(jnp.bfloat16))

    grid = (Np // tn,)
    out_p = pl.pallas_call(
        _rsr_kernel,
        out_shape=jax.ShapeDtypeStruct((Np, Fp), jnp.float32),
        grid_spec=pltpu.PrefetchScalarGridSpec(
            num_scalar_prefetch=0,
            grid=grid,
            in_specs=[
                pl.BlockSpec((1, Np), lambda i: (0, 0)),    # el (all src, lane-dense)
                pl.BlockSpec((tn, 1), lambda i: (i, 0)),    # er (dst tile)
                pl.BlockSpec((tn, Np), lambda i: (i, 0)),   # masked rel bias tile
                pl.BlockSpec((Np, Fp), lambda i: (0, 0)),   # nfeat (all src, bf16)
            ],
            out_specs=pl.BlockSpec((tn, Fp), lambda i: (i, 0)),
        ),
        compiler_params=pltpu.CompilerParams(
            dimension_semantics=("parallel",)),
    )(el_p, er_p, relb_p, nfeat_p)
    # TODO(synk): for very large N on v7x (64 MiB VMEM), add a second
    # "arbitrary" src grid axis with online-softmax accumulators instead of
    # keeping all source nodes resident.
    return out_p[:N, :F]


def rsr_conv_ref(nfeat, adj, rel_bias, w_head, b_head, w_tail, b_tail):
    el = nfeat @ w_head.T + b_head
    er = nfeat @ w_tail.T + b_tail
    logits = er + el.T + rel_bias
    mask = adj > 0.0
    logits = jnp.where(mask, logits, -1e30)
    m = jnp.max(logits, axis=-1, keepdims=True)
    p = jnp.where(mask, jnp.exp(logits - m), 0.0)
    d = jnp.sum(p, axis=-1, keepdims=True)
    attn = p / jnp.maximum(d, 1e-30)
    return attn @ nfeat


if __name__ == "__main__":
    N, F, E = 200, 48, 3          # nodes, in_feats, num_etypes (N not /128)
    key = jax.random.PRNGKey(0)
    k = jax.random.split(key, 9)

    nfeat = jax.random.normal(k[0], (N, F), jnp.float32)

    # Deterministic parameter init mirroring reset_parameters():
    # xavier_normal_ with gain = calculate_gain('relu') = sqrt(2).
    gain = math.sqrt(2.0)
    std_lin = gain * math.sqrt(2.0 / (F + 1))          # Linear(F, 1) weight
    w_head = (jax.random.normal(k[1], (1, F)) * std_lin).astype(jnp.float32)
    w_tail = (jax.random.normal(k[2], (1, F)) * std_lin).astype(jnp.float32)
    bound = 1.0 / math.sqrt(F)                          # default Linear bias init
    b_head = ((jax.random.uniform(k[3], (1, 1)) * 2 - 1) * bound).astype(jnp.float32)
    b_tail = ((jax.random.uniform(k[4], (1, 1)) * 2 - 1) * bound).astype(jnp.float32)
    std_rel = gain * math.sqrt(2.0 / (E + 1))           # rel_weight [E, 1]
    rel_weight = (jax.random.normal(k[5], (E, 1)) * std_rel).astype(jnp.float32)

    # Synthetic heterogeneous graph (dense form): adj[dst, src] + per-edge type.
    adj = (jax.random.uniform(k[6], (N, N)) < 0.4).astype(jnp.float32)
    adj = adj.at[0, :].set(0.0)                         # one zero-in-degree node
    etype = jax.random.randint(k[7], (N, N), 0, E)
    rel_bias = rel_weight[etype, 0].astype(jnp.float32)

    out = rsr_conv(nfeat, adj, rel_bias, w_head, b_head, w_tail, b_tail, tn=128)
    out = jax.block_until_ready(out)

    ref = rsr_conv_ref(nfeat, adj, rel_bias, w_head, b_head, w_tail, b_tail)
    # Tolerance accounts for the intentional bf16 aggregation matmul.
    np.testing.assert_allclose(np.asarray(out), np.asarray(ref),
                               rtol=2e-2, atol=2e-2)
    assert float(jnp.max(jnp.abs(out[0]))) == 0.0       # zero-in-degree row

    print("KERNEL_OK")
</pallas_src>

<mosaic_0001>
module attributes {stable_mosaic.version = 11 : i64} {
  func.func @_rsr_kernel(%arg0: i32, %arg1: memref<1x256xf32, #tpu.memory_space<vmem>>, %arg2: memref<128x1xf32, #tpu.memory_space<vmem>>, %arg3: memref<128x256xf32, #tpu.memory_space<vmem>>, %arg4: memref<256x128xbf16, #tpu.memory_space<vmem>>, %arg5: memref<128x128xf32, #tpu.memory_space<vmem>>) attributes {dimension_semantics = [#tpu.dimension_semantics<parallel>], iteration_bounds = array<i64: 2>, scalar_prefetch = 0 : i64, scratch_operands = 0 : i64, tpu.core_type = #tpu.core_type<tc>, window_params = [{pipeline_mode = #tpu.pipeline_mode<synchronous>, transform_indices = @transform_0, window_bounds = array<i64: 1, 256>}, {transform_indices = @transform_1, window_bounds = array<i64: 128, 1>}, {transform_indices = @transform_2, window_bounds = array<i64: 128, 256>}, {pipeline_mode = #tpu.pipeline_mode<synchronous>, transform_indices = @transform_3, window_bounds = array<i64: 256, 128>}, {transform_indices = @transform_4, window_bounds = array<i64: 128, 128>}]} {
    %c0 = arith.constant 0 : index
    %c0_0 = arith.constant 0 : index
    %0 = vector.load %arg3[%c0, %c0_0] : memref<128x256xf32, #tpu.memory_space<vmem>>, vector<128x256xf32>
    %cst = arith.constant -1.000000e+29 : f32
    %1 = vector.broadcast %cst : f32 to vector<128x256xf32>
    %2 = arith.cmpf ogt, %0, %1 : vector<128x256xf32>
    %c0_1 = arith.constant 0 : index
    %c0_2 = arith.constant 0 : index
    %3 = vector.load %arg2[%c0_1, %c0_2] : memref<128x1xf32, #tpu.memory_space<vmem>>, vector<128x1xf32>
    %c0_3 = arith.constant 0 : index
    %c0_4 = arith.constant 0 : index
    %4 = vector.load %arg1[%c0_3, %c0_4] : memref<1x256xf32, #tpu.memory_space<vmem>>, vector<1x256xf32>
    %5 = vector.broadcast %3 : vector<128x1xf32> to vector<128x256xf32>
    %6 = vector.broadcast %4 : vector<1x256xf32> to vector<128x256xf32>
    %7 = arith.addf %5, %6 : vector<128x256xf32>
    %8 = arith.addf %7, %0 : vector<128x256xf32>
    %cst_5 = arith.constant dense<0xFF800000> : vector<128xf32>
    %9 = vector.multi_reduction <maximumf>, %8, %cst_5 [1] : vector<128x256xf32> to vector<128xf32>
    %10 = vector.shape_cast %9 : vector<128xf32> to vector<128x1xf32>
    %11 = vector.broadcast %10 : vector<128x1xf32> to vector<128x256xf32>
    %12 = arith.subf %8, %11 : vector<128x256xf32>
    %13 = math.exp %12 : vector<128x256xf32>
    %cst_6 = arith.constant 0.000000e+00 : f32
    %14 = vector.broadcast %cst_6 : f32 to vector<128x256xf32>
    %15 = arith.select %2, %13, %14 : vector<128x256xi1>, vector<128x256xf32>
    %cst_7 = arith.constant dense<0.000000e+00> : vector<128xf32>
    %16 = vector.multi_reduction <add>, %15, %cst_7 [1] : vector<128x256xf32> to vector<128xf32>
    %17 = vector.shape_cast %16 : vector<128xf32> to vector<128x1xf32>
    %18 = arith.truncf %15 : vector<128x256xf32> to vector<128x256xbf16>
    %c0_8 = arith.constant 0 : index
    %c0_9 = arith.constant 0 : index
    %19 = vector.load %arg4[%c0_8, %c0_9] : memref<256x128xbf16, #tpu.memory_space<vmem>>, vector<256x128xbf16>
    %cst_10 = arith.constant dense<0.000000e+00> : vector<128x128xf32>
    %20 = tpu.matmul %18, %19, %cst_10 {dimension_numbers = #tpu.dot_dimension_numbers<[1], [0], [0], [1], [0, 0, 1, 1], [], []>} : vector<128x256xbf16>, vector<256x128xbf16>, vector<128x128xf32> -> vector<128x128xf32>
    %cst_11 = arith.constant 1.000000e-30 : f32
    %21 = vector.broadcast %cst_11 : f32 to vector<128x1xf32>
    %22 = arith.maximumf %17, %21 : vector<128x1xf32>
    %23 = tpu.reciprocal %22 {approx = true} : vector<128x1xf32> -> vector<128x1xf32>
    %24 = vector.broadcast %23 : vector<128x1xf32> to vector<128x128xf32>
    %25 = arith.mulf %20, %24 : vector<128x128xf32>
    %c0_12 = arith.constant 0 : index
    %c0_13 = arith.constant 0 : index
    %26 = vector.load %arg5[%c0_12, %c0_13] : memref<128x128xf32, #tpu.memory_space<vmem>>, vector<128x128xf32>
    tpu.vector_store %arg5[%c0_12, %c0_13], %25 {strides = array<i32>} : memref<128x128xf32, #tpu.memory_space<vmem>>, vector<128x128xf32>,
    return
  }
  func.func @transform_0(%arg0: i32) -> (i32, i32) {
    %c0_i32 = arith.constant 0 : i32
    %c0_i32_0 = arith.constant 0 : i32
    %c0_i32_1 = arith.constant 0 : i32
    return %c0_i32, %c0_i32_0 : i32, i32
  }
  func.func @transform_1(%arg0: i32) -> (i32, i32) {
    %c0_i32 = arith.constant 0 : i32
    %c0_i32_0 = arith.constant 0 : i32
    return %arg0, %c0_i32 : i32, i32
  }
  func.func @transform_2(%arg0: i32) -> (i32, i32) {
    %c0_i32 = arith.constant 0 : i32
    %c0_i32_0 = arith.constant 0 : i32
    return %arg0, %c0_i32 : i32, i32
  }
  func.func @transform_3(%arg0: i32) -> (i32, i32) {
    %c0_i32 = arith.constant 0 : i32
    %c0_i32_0 = arith.constant 0 : i32
    %c0_i32_1 = arith.constant 0 : i32
    return %c0_i32, %c0_i32_0 : i32, i32
  }
  func.func @transform_4(%arg0: i32) -> (i32, i32) {
    %c0_i32 = arith.constant 0 : i32
    %c0_i32_0 = arith.constant 0 : i32
    return %arg0, %c0_i32 : i32, i32
  }
}

</mosaic_0001>

<bundles_post_ra>
// kernel: tpu_custom_call.1
= control target key start
LH: loop header
LB: loop body
LE: loop exit
PB: predicated region body
PF: predicated region fallthrough
CT: control target
= control target key end

     0   :  { %9 = vsyncpa [#allocation3], 0  ;;  %s2398_s0 = inlined_call_operand.vmem [shape: f32[1,256], index: 0, kind: input, shape index: {}]   ;;  %s2399_s1 = inlined_call_operand.vmem [shape: f32[256,1], index: 1, kind: input, shape index: {}]   ;;  %s2400_s2 = inlined_call_operand.hbm [shape: f32[256,256], index: 2, kind: input, shape index: {}]   ;;  %s2401_s3 = inlined_call_operand.vmem [shape: bf16[256,128], index: 3, kind: input, shape index: {}]   ;;  %s2402_s4 = inlined_call_operand.hbm [shape: f32[256,128], index: 4, kind: output, shape index: {}]  }
   0x1   :  { %11 = vsyncpa [#allocation3 + $0x1], 0 }
   0x2   :  { %12 = vsyncpa [#allocation4], 0 }
   0x3   :  { %14 = vsyncpa [#allocation4 + $0x1], 0  ;;  %s1565_s15 = smov 0   ;;  %s1567_s16 = smov 0  }
   0x4   :  { %s1569_s17 = smov 0   ;;  %s1571_s18 = smov 0  }
   0x5 LB: > { %s1586_s19 = sadd.s32 4294967295, %s1531_s18   ;;  %s1106_s20 = sadd.s32 4294967294, %s1531_s18   ;;  %s1531_s18 = sphi %s1571_s18, %s2603_s18   ;;  %s1527_s17 = sphi %s1569_s17, %s2602_s17   ;;  %s1523_s16 = sphi %s1567_s16, %s2601_s16   ;;  %s1519_s15 = sphi %s1565_s15, %s2600_s15  }
   0x6   : > { %s1590_s21 = sadd.s32 1, %s1531_s18   ;;  %s74_s22 = sadd.s32 1, %s1527_s17 }
   0x7   : > { %s71_s23 = ssub.s32 %s1531_s18, %s1590_s21  ;;  %p81_p0 = scmp.ne.s32.totalorder %s1527_s17, %s1523_s16 }
   0x8   : > { %p72_p1 = scmp.eq.s32.totalorder %s71_s23, 0  ;;  %p82_p2 = scmp.eq.s32.totalorder %s1531_s18, 0 }
   0x9   : > { %p87_p3 = scmp.ne.s32.totalorder %s1523_s16, %s1519_s15  ;;  %p88_p4 = scmp.eq.s32.totalorder %s1586_s19, 0 }
   0xa   : > { %s1602_s24 = scalar_select %p72_p1, %s1527_s17, %s74_s22  }
   0xb   : > { %p1604_p5 = por %p82_p2, %p81_p0  ;;  %p1608_p6 = por %p88_p4, %p87_p3 }
   0xc   : > { %p132_p7 = scmp.eq.s32.totalorder %s1586_s19, 1  ;;  %p138_p8 = scmp.eq.s32.totalorder %s1106_s20, 1 }
   0xd   : > { %p1282_p10 = scmp.lt.s32.totalorder %s1531_s18, 2  ;;  %s173_s29 = sand.u32 1, %s1527_s17  }
   0xe   : > { %p1615_p11 = por %p132_p7, %p81_p0  ;;  %p1619_p12 = por %p138_p8, %p87_p3 }
   0xf   : > { %s1188_s30 = sshll.u32 %s1531_s18, 12  ;;  %s1109_s5 = sshll.u32 %s173_s29, 8 }
  0x10   : > { %s2466_s27 = scalar_select %p1615_p11, 1, 0 }
  0x11   : > { %s2467_s28 = scalar_select %p1619_p12, 1, 0 }
  0x12   : > { %s1628_s8 = scalar_lea.hbm %s2400_s2, %s1188_s30  ;;  %s177_s9 = scalar_lea.vmem [#allocation2], %s1109_s5 }
  0x13   : > { %s185_s10 = sshll.u32 %s177_s9, 4  ;;  %p1632_p13 = pnand %p1282_p10, %p1604_p5  ;;  %s1636_s10 = int_to_ptr.vmem [resolvable:$true] %s185_s10 }
  0x14   : > { %s1638_s12 = scalar_lea.sflag [#allocation3], %s173_s29  ;;  %s1435_s13 = scalar_lea.hbm %s1628_s8, 4096 }
  0x15   : > { %p1436_p0 = scmp.ne.s32.totalorder %s1628_s8, %s1435_s13  ;;  %p1437_p1 = pneg %p1632_p13 }
  0x16   : > { %s1440_s22 = scalar_lea.hbm %s2400_s2, 8192  ;;  %p1441_p4 = scmp.lt.u32.totalorder %s1628_s8, %s2400_s2 }
  0x17   : > { %p1438_p2 = pnand %p1437_p1, %p1436_p0  ;;  %p1442_p5 = scmp.lt.u32.totalorder %s1440_s22, %s1435_s13 }
  0x18   : > { %p1444_p8 = scmp.lt.u32.totalorder %s1435_s13, %s1628_s8 }
  0x19   : > { %p1439_p3 = pneg %p1438_p2  ;;  %p1443_p7 = por %p1442_p5, %p1441_p4 }
  0x1b   : > { %p1445_p10 = por %p1444_p8, %p1443_p7 }
  0x1d   : > { %p1446_p9 = pnand %p1445_p10, %p1439_p3 }
  0x1f   : > { %1449 = shalt.err (!%p1446_p9)
}
  0x20   : > { %s1450_s29 = scalar_lea.vmem %s1636_s10, 4096  ;;  %s1533_s30 = smov [#allocation2]  }
  0x21   : > { %p1451_p0 = scmp.ne.s32.totalorder %s1636_s10, %s1450_s29  ;;  %s1455_s5 = sshll.u32 %s1533_s30, 4  ;;  %s1456_s5 = int_to_ptr.vmem [resolvable:$false] %s1455_s5 }
  0x22   : > { %s1457_s6 = scalar_lea.vmem %s1456_s5, 8192  ;;  %p1458_p11 = scmp.lt.s32.totalorder %s1636_s10, %s1456_s5 }
  0x23   : > { %p1453_p2 = pnand %p1451_p0, %p1437_p1  ;;  %p1459_p4 = scmp.lt.s32.totalorder %s1457_s6, %s1450_s29 }
  0x25   : > { %p1454_p12 = pneg %p1453_p2  ;;  %p1460_p5 = por %p1459_p4, %p1458_p11 }
  0x27   : > { %p1461_p7 = pnand %p1460_p5, %p1454_p12 }
  0x29   : > { %1464 = shalt.err (!%p1461_p7)
}
  0x2a   : > { %s1534_s7 = smov 256   ;;  %s1535_s9 = smov 16  }
  0x2b   : > { %1277 = dma.hbm_to_vmem [thread:$0]  (!%p1632_p13), %s1628_s8, 4096, %s1636_s10, %s1638_s12, %s1534_s7, %s1534_s7, %s1535_s9  }
  0x2c   : > { %p1113_p9 = scmp.ge.s32.totalorder %s1531_s18, 1  ;;  %p193_p1 = scmp.lt.s32.totalorder %s1531_s18, 3 }
  0x2e   : > { %p194_p3 = pnand %p1113_p9, %p193_p1 }
  0x30   : > { %197 = sbr.rel (%p194_p3) target bundleno = 636 (0x27c), region = 36 }
  0x37   : > { %s1669_s13 = sand.u32 1, %s1523_s16  }
  0x38   : > { %s1114_s14 = sshll.u32 %s1669_s13, 8  ;;  %s200_s20 = scalar_lea.sflag [#allocation3], %s1669_s13 }
  0x39   : > { %s1673_s22 = scalar_lea.vmem [#allocation2], %s1114_s14 }
  0x3a   : > { %1510 = dma.done.wait (%p1608_p6), %s200_s20, 4096  }
  0x3b   : > { %1512 = vsyncadd (%p1608_p6), %s200_s20, 4294963200  ;;  %s1116_s8 = sshll.u32 %s1586_s19, 4  ;;  %v1536_v0 = vmov 0   ;;  %v1323_v17 = vld [vmem:[%s2401_s3 + $0x40] sm:$0xff]   ;;  %v1325_v19 = vld [vmem:[%s2401_s3 + $0x48] sm:$0xff]   ;;  %v404_v23 = vlaneseq  ;;  %s1115_s30 = sshll.u32 %s1669_s13, 7 }
  0x3c   : > { %1322 = vset.pattern.permute.xlu1 %v1536_v0  ;;  %1321 = vset.pattern.permute.xlu0 %v1536_v0  ;;  %p234_p11 = scmp.lt.s32.totalorder %s1116_s8, 31  ;;  %v1324_v18 = vld [vmem:[%s2401_s3] sm:$0xff]   ;;  %v1326_v20 = vld [vmem:[%s2401_s3 + $0x8] sm:$0xff]   ;;  %v1327_v21 = vld [vmem:[%s2401_s3 + $0x50] sm:$0xff]   ;;  %s2327_s5 = scalar_lea.vmem [#allocation5], %s1115_s30 }
  0x3d   : > { %1190 = vmatprep.subr.bf16.mxu0 %v1323_v17  ;;  %1254 = vmatprep.subr.bf16.mxu1 %v1323_v17  ;;  %v1328_v22 = vld [vmem:[%s2401_s3 + $0x10] sm:$0xff]   ;;  %v405_v24 = vshrl.u32 %v404_v23, 7  ;;  %v322_v27 = vld [vmem:[%s2398_s0] sm:$0x3]  ;;  %v1712_v33 = vld [vmem:[%s1673_s22 + $0x8] sm:$0xff]  ;;  %s1189_s6 = sshll.u32 %s1586_s19, 11 }
  0x3e   : > { %s2605_s8 = smov (!%p234_p11, %s1116_s8), 31  ;;  %1191 = vmatpush3.bf16.msra.mxu0 %v1324_v18  ;;  %1262 = vmatpush3.bf16.msra.mxu1 %v1324_v18  ;;  %v1709_v32 = vld [vmem:[%s1673_s22] sm:$0xff]  ;;  %v1722_v39 = vld [vmem:[%s1673_s22 + $0x88] sm:$0xff]  ;;  %v1731_v44 = vld [vmem:[%s1673_s22 + $0x10] sm:$0xff]  ;;  %vm2425_vm1 = vcmp.gt.f32.partialorder %v1712_v33, -1e+29 }
  0x3f   : > { %s1117_s10 = sshll.u32 %s2605_s8, 3  ;;  %1192 = vmatprep.subr.bf16.mxu0 %v1325_v19  ;;  %1255 = vmatprep.subr.bf16.mxu1 %v1325_v19  ;;  %v406_v25 = vsub.s32 0, %v405_v24  ;;  %v410_v26 = vsub.s32 1, %v405_v24  ;;  %v1719_v38 = vld [vmem:[%s1673_s22 + $0x80] sm:$0xff]  ;;  %v1734_v45 = vld [vmem:[%s1673_s22 + $0x18] sm:$0xff]  ;;  %v1755_v55 = vld [vmem:[%s1673_s22 + $0x90] sm:$0xff] }
  0x40   : > { %s237_s23 = scalar_lea.vmem %s2399_s1, %s1117_s10  ;;  %v1758_v56 = vld [vmem:[%s1673_s22 + $0x98] sm:$0xff]  ;;  %v1763_v60 = vld [vmem:[%s1673_s22 + $0x20] sm:$0xff]  ;;  %v1766_v61 = vld [vmem:[%s1673_s22 + $0x28] sm:$0xff]  ;;  %vm2419_vm0 = vcmp.gt.f32.partialorder %v1734_v45, -1e+29  ;;  %s1021_s7 = sshll.u32 %s2327_s5, 4  ;;  %s2352_s7 = int_to_ptr.vmem [resolvable:$true] %s1021_s7 }
  0x41   : > { %v314_v1 = vld [vmem:[%s237_s23 + $0x40] sm:$0xff]  ;;  %v315_v3 = vld [vmem:[%s237_s23 + $0x48] sm:$0xff]  ;;  %v309_v5 = vld [vmem:[%s237_s23 + $0x18] sm:$0xff]  ;;  %v1704_v28 = vrot.slane %v322_v27, %v406_v25  ;;  %v1706_v29 = vrot.slane %v322_v27, %v410_v26  ;;  %vm2429_vm2 = vcmp.gt.f32.partialorder %v1709_v32, -1e+29  ;;  %s1008_s19 = scalar_lea.sflag [#allocation4], %s1669_s13 }
  0x42   : > { %v306_v2 = vld [vmem:[%s237_s23] sm:$0xff]  ;;  %365 = vperm.xlu1 %1322, %v314_v1   ;;  %v307_v4 = vld [vmem:[%s237_s23 + $0x8] sm:$0xff]  ;;  %v308_v6 = vld [vmem:[%s237_s23 + $0x10] sm:$0xff]  ;;  %1193 = vmatpush3.bf16.msra.mxu0 %v1326_v20  ;;  %vm2422_vm4 = vcmp.gt.f32.partialorder %v1731_v44, -1e+29  ;;  %s1465_s20 = scalar_lea.vmem %s2352_s7, 2048 }
  0x43   : > { %325 = vperm.xlu0 %1321, %v306_v2   ;;  %v317_v7 = vld [vmem:[%s237_s23 + $0x58] sm:$0xff]  ;;  %v316_v8 = vld [vmem:[%s237_s23 + $0x50] sm:$0xff]  ;;  %v311_v9 = vld [vmem:[%s237_s23 + $0x28] sm:$0xff]  ;;  %1263 = vmatpush3.bf16.msra.mxu1 %v1326_v20  ;;  %vm2413_vm6 = vcmp.gt.f32.partialorder %v1758_v56, -1e+29  ;;  %p1466_p6 = scmp.ne.s32.totalorder %s2352_s7, %s1465_s20  ;;  %p2597_p12 = scmp.ne.s32.totalorder %s2466_s27, 0 }
  0x44   : > { %v310_v10 = vld [vmem:[%s237_s23 + $0x20] sm:$0xff]  ;;  %v319_v11 = vld [vmem:[%s237_s23 + $0x68] sm:$0xff]  ;;  %v313_v13 = vld [vmem:[%s237_s23 + $0x38] sm:$0xff]  ;;  %1194 = vmatprep.subr.bf16.mxu0 %v1327_v21  ;;  %1256 = vmatprep.subr.bf16.mxu1 %v1327_v21  ;;  %vm2415_vm7 = vcmp.gt.f32.partialorder %v1722_v39, -1e+29  ;;  %s1537_s8 = smov [#allocation5]  }
  0x45   : > { %v318_v12 = vld [vmem:[%s237_s23 + $0x60] sm:$0xff]  ;;  %v312_v14 = vld [vmem:[%s237_s23 + $0x30] sm:$0xff]  ;;  %v321_v15 = vld [vmem:[%s237_s23 + $0x78] sm:$0xff]  ;;  %vm2416_vm9 = vcmp.gt.f32.partialorder %v1719_v38, -1e+29  ;;  %p1467_p13 = pnand %p1466_p6, %p2597_p12  ;;  %s1469_s10 = sshll.u32 %s1537_s8, 4  ;;  %s1470_s10 = int_to_ptr.vmem [resolvable:$false] %s1469_s10 }
  0x46   : > { %370 = vperm.xlu1 %1322, %v315_v3   ;;  %v320_v16 = vld [vmem:[%s237_s23 + $0x70] sm:$0xff]  ;;  %1195 = vmatpush3.bf16.msra.mxu0 %v1328_v22  ;;  %v1822_v24 = vld [vmem:[%s1673_s22 + $0xb8] sm:$0xff]  ;;  %v1825_v27 = vld [vmem:[%s1673_s22 + $0x40] sm:$0xff]  ;;  %vm2414_vm10 = vcmp.gt.f32.partialorder %v1755_v55, -1e+29  ;;  %s1471_s11 = scalar_lea.vmem %s1470_s10, 4096  ;;  %p1472_p10 = scmp.lt.s32.totalorder %s2352_s7, %s1470_s10 }
  0x47   : > { %330 = vperm.xlu0 %1321, %v307_v4   ;;  %1264 = vmatpush3.bf16.msra.mxu1 %v1328_v22  ;;  %v1773_v2 = vld [vmem:[%s1673_s22 + $0x30] sm:$0xff]  ;;  %2471 = vst [vmem:[#allocation10_spill] sm:$0xff] %v1822_v24  ;;  %vm2001_vm3 = vmpackc.low %vm2419_vm0, %vm2425_vm1  ;;  %vm2418_vm13 = vcmp.gt.f32.partialorder %v1766_v61, -1e+29  ;;  %vm2421_vm14 = vcmp.gt.f32.partialorder %v1763_v60, -1e+29  ;;  %p1468_p8 = pneg %p1467_p13  ;;  %p1473_p0 = scmp.lt.s32.totalorder %s1471_s11, %s1465_s20 }
  0x48   : > { %v1813_v21 = vld [vmem:[%s1673_s22 + $0xb0] sm:$0xff]  ;;  %vm2010_vm5 = vmpackc.low %vm2422_vm4, %vm2429_vm2 }
  0x49   : > { %2470 = vst [vmem:[#allocation9_spill] sm:$0xff] %v1813_v21  ;;  %vm2020_vm8 = vmpackc.low %vm2413_vm6, %vm2415_vm7  ;;  %vm2420_vm6 = vcmp.gt.f32.partialorder %v1773_v2, -1e+29  ;;  %vm2423_vm7 = vcmp.gt.f32.partialorder %v1822_v24, -1e+29  ;;  %p1474_p2 = por %p1473_p0, %p1472_p10 }
  0x4a   : > { %340 = vperm.xlu1 %1322, %v309_v5   ;;  %vm2030_vm11 = vmpackc.low %vm2414_vm10, %vm2416_vm9  ;;  %vm2426_vm0 = vcmp.gt.f32.partialorder %v1813_v21, -1e+29 }
  0x4b   : > { %335 = vperm.xlu0 %1321, %v308_v6   ;;  %v1784_v6 = vld [vmem:[%s1673_s22 + $0x38] sm:$0xff]  ;;  %vm2050_vm10 = vmpackc.low %vm2420_vm6, %vm2421_vm14  ;;  %p1475_p4 = pnand %p1474_p2, %p1468_p8 }
  0x4c   : > { %vm2417_vm12 = vcmp.gt.f32.partialorder %v1784_v6, -1e+29 }
  0x4d   : > { %vm2041_vm15 = vmpackc.low %vm2417_vm12, %vm2418_vm13 }
  0x4e   : > { %380 = vperm.xlu1 %1322, %v317_v7  }
  0x4f   : > { %375 = vperm.xlu0 %1321, %v316_v8  }
  0x52   : > { %350 = vperm.xlu1 %1322, %v311_v9  }
  0x53   : > { %345 = vperm.xlu0 %1321, %v310_v10  }
  0x56   : > { %390 = vperm.xlu1 %1322, %v319_v11   ;;  %v1793_v11 = vld [vmem:[%s1673_s22 + $0xa0] sm:$0xff] }
  0x57   : > { %385 = vperm.xlu0 %1321, %v318_v12   ;;  %v1796_v12 = vld [vmem:[%s1673_s22 + $0xa8] sm:$0xff]  ;;  %vm2428_vm13 = vcmp.gt.f32.partialorder %v1793_v11, -1e+29 }
  0x58   : > { %2469 = vst [vmem:[#allocation8_spill] sm:$0xff] %v1796_v12  ;;  %vm2424_vm9 = vcmp.gt.f32.partialorder %v1796_v12, -1e+29  ;;  %vm2070_vm6 = vmpackc.low %vm2426_vm0, %vm2428_vm13 }
  0x59   : > { %vm2060_vm12 = vmpackc.low %vm2423_vm7, %vm2424_vm9  ;;  %vm2435_vm9 = vcmp.gt.f32.partialorder %v1825_v27, -1e+29 }
  0x5a   : > { %360 = vperm.xlu1 %1322, %v313_v13  }
  0x5b   : > { %355 = vperm.xlu0 %1321, %v312_v14  }
  0x5e   : > { %400 = vperm.xlu1 %1322, %v321_v15  }
  0x5f   : > { %395 = vperm.xlu0 %1321, %v320_v16  }
  0xc1   : > { %v366_v30 = vpop.permute.xlu1 %365 }
  0xc2   : > { %v326_v31 = vpop.permute.xlu0 %325  ;;  %v430_v34 = vadd.f32 %v1704_v28, %v366_v30  ;;  %v431_v35 = vadd.f32 %v1706_v29, %v366_v30  ;;  %v1828_v30 = vld [vmem:[%s1673_s22 + $0x48] sm:$0xff] }
  0xc3   : > { %v414_v36 = vadd.f32 %v1704_v28, %v326_v31  ;;  %v415_v37 = vadd.f32 %v1706_v29, %v326_v31  ;;  %vm2432_vm14 = vcmp.gt.f32.partialorder %v1828_v30, -1e+29 }
  0xc4   : > { %v1737_v46 = vadd.f32 %v430_v34, %v1719_v38  ;;  %v1740_v47 = vadd.f32 %v431_v35, %v1722_v39 }
  0xc5   : > { %v1725_v40 = vadd.f32 %v414_v36, %v1709_v32  ;;  %v1728_v41 = vadd.f32 %v415_v37, %v1712_v33  ;;  %v371_v42 = vpop.permute.xlu1 %370 }
  0xc6   : > { %v331_v43 = vpop.permute.xlu0 %330  ;;  %v432_v50 = vadd.f32 %v1704_v28, %v371_v42  ;;  %v433_v51 = vadd.f32 %v1706_v29, %v371_v42  ;;  %v502_v59 = vmax.f32 %v1737_v46, %v1740_v47 }
  0xc7   : > { %v416_v48 = vadd.f32 %v1704_v28, %v331_v43  ;;  %v417_v49 = vadd.f32 %v1706_v29, %v331_v43  ;;  %v478_v52 = vmax.f32 %v1725_v40, %v1728_v41 }
  0xc8   : > { %v1778_v4 = vadd.f32 %v432_v50, %v1755_v55  ;;  %v1781_v5 = vadd.f32 %v433_v51, %v1758_v56  ;;  %v1851_v51 = vld [vmem:[%s1673_s22 + $0x50] sm:$0xff] }
  0xc9   : > { %v1749_v53 = vadd.f32 %v416_v48, %v1731_v44  ;;  %v1752_v54 = vadd.f32 %v417_v49, %v1734_v45  ;;  %479 = vmax.xlane.f32.xlu0 %v478_v52  ;;  %v341_v57 = vpop.permute.xlu1 %340  ;;  %v1854_v52 = vld [vmem:[%s1673_s22 + $0x58] sm:$0xff]  ;;  %vm2433_vm1 = vcmp.gt.f32.partialorder %v1851_v51, -1e+29 }
  0xca   : > { %v336_v58 = vpop.permute.xlu0 %335  ;;  %v420_v62 = vadd.f32 %v1704_v28, %v341_v57  ;;  %v421_v63 = vadd.f32 %v1706_v29, %v341_v57  ;;  %v505_v20 = vmax.f32 %v1778_v4, %v1781_v5  ;;  %vm2430_vm4 = vcmp.gt.f32.partialorder %v1854_v52, -1e+29  ;;  %vm2090_vm0 = vmpackc.low %vm2433_vm1, %vm2435_vm9 }
  0xcb   : > { %v418_v0 = vadd.f32 %v1704_v28, %v336_v58  ;;  %v419_v1 = vadd.f32 %v1706_v29, %v336_v58  ;;  %v481_v3 = vmax.f32 %v1749_v53, %v1752_v54  ;;  %vm2080_vm7 = vmpackc.low %vm2430_vm4, %vm2432_vm14 }
  0xcc   : > { %v1799_v13 = vadd.f32 %v420_v62, %v1773_v2  ;;  %v1805_v17 = vadd.f32 %v421_v63, %v1784_v6  ;;  %v1860_v62 = vld [vmem:[%s1673_s22 + $0xc8] sm:$0xff] }
  0xcd   : > { %v1787_v7 = vadd.f32 %v418_v0, %v1763_v60  ;;  %v1790_v8 = vadd.f32 %v419_v1, %v1766_v61  ;;  %482 = vmax.xlane.f32.xlu1 %v481_v3  ;;  %503 = vmax.xlane.f32.xlu0 %v502_v59  ;;  %v381_v9 = vpop.permute.xlu1 %380  ;;  %v1857_v59 = vld [vmem:[%s1673_s22 + $0xc0] sm:$0xff]  ;;  %2476 = vst [vmem:[#allocation15_spill] sm:$0xff] %v1860_v62  ;;  %vm2438_vm13 = vcmp.gt.f32.partialorder %v1860_v62, -1e+29 }
  0xce   : > { %v376_v10 = vpop.permute.xlu0 %375  ;;  %v436_v14 = vadd.f32 %v1704_v28, %v381_v9  ;;  %v437_v18 = vadd.f32 %v1706_v29, %v381_v9  ;;  %v487_v35 = vmax.f32 %v1799_v13, %v1805_v17  ;;  %2475 = vst [vmem:[#allocation14_spill] sm:$0xff] %v1857_v59  ;;  %v1867_v9 = vld [vmem:[%s1673_s22 + $0xd0] sm:$0xff]  ;;  %vm2441_vm14 = vcmp.gt.f32.partialorder %v1857_v59, -1e+29 }
  0xcf   : > { %v434_v15 = vadd.f32 %v1704_v28, %v376_v10  ;;  %v435_v16 = vadd.f32 %v1706_v29, %v376_v10  ;;  %v484_v19 = vmax.f32 %v1787_v7, %v1790_v8  ;;  %2477 = vst [vmem:[#allocation16_spill] sm:$0xff] %v1867_v9 }
  0xd0   : > { %v1835_v36 = vadd.f32 %v436_v14, %v1813_v21  ;;  %v1842_v48 = vadd.f32 %v437_v18, %v1822_v24  ;;  %v1880_v18 = vld [vmem:[%s1673_s22 + $0xd8] sm:$0xff]  ;;  %v2511_v24 = vmov 0 }
  0xd1   : > { %v1816_v22 = vadd.f32 %v434_v15, %v1793_v11  ;;  %v1819_v23 = vadd.f32 %v435_v16, %v1796_v12  ;;  %485 = vmax.xlane.f32.xlu1 %v484_v19  ;;  %506 = vmax.xlane.f32.xlu0 %v505_v20  ;;  %v351_v25 = vpop.permute.xlu1 %350  ;;  %2480 = vst [vmem:[#allocation19_spill] sm:$0xff] %v1880_v18  ;;  %v2512_v24 = vsel %vm2090_vm0, 4294967295, %v2511_v24  ;;  %vm2436_vm2 = vcmp.gt.f32.partialorder %v1880_v18, -1e+29 }
  0xd2   : > { %v346_v26 = vpop.permute.xlu0 %345  ;;  %2472 = vst [vmem:[#allocation11_spill] sm:$0xff] %v1835_v36  ;;  %v424_v37 = vadd.f32 %v1704_v28, %v351_v25  ;;  %v425_v42 = vadd.f32 %v1706_v29, %v351_v25  ;;  %2473 = vst [vmem:[#allocation12_spill] sm:$0xff] %v1842_v48  ;;  %v511_v14 = vmax.f32 %v1835_v36, %v1842_v48  ;;  %v1329_v25 = vld [vmem:[%s2401_s3 + $0x58] sm:$0xff]  }
  0xd3   : > { %v422_v31 = vadd.f32 %v1704_v28, %v346_v26  ;;  %v423_v34 = vadd.f32 %v1706_v29, %v346_v26  ;;  %v508_v43 = vmax.f32 %v1816_v22, %v1819_v23  ;;  %1196 = vmatprep.subr.bf16.mxu0 %v1329_v25  ;;  %1257 = vmatprep.subr.bf16.mxu1 %v1329_v25  ;;  %v1924_v48 = vld [vmem:[%s1673_s22 + $0x78] sm:$0xff]  ;;  %vm2100_vm4 = vmpackc.low %vm2436_vm2, %vm2438_vm13 }
  0xd4   : > { %v1874_v15 = vadd.f32 %v424_v37, %v1851_v51  ;;  %v1877_v16 = vadd.f32 %v425_v42, %v1854_v52  ;;  %v1330_v42 = vld [vmem:[%s2401_s3 + $0x18] sm:$0xff]   ;;  %2487 = vst [vmem:[#allocation26_spill] sm:$0xff] %v1924_v48  ;;  %2513 = vst [vmem:[#allocation32_spill] sm:$0xff] %v2512_v24  ;;  %v2517_v24 = vmov 0  ;;  %vm2442_vm0 = vcmp.gt.f32.partialorder %v1924_v48, -1e+29 }
  0xd5   : > { %v1845_v49 = vadd.f32 %v422_v31, %v1825_v27  ;;  %v1848_v50 = vadd.f32 %v423_v34, %v1828_v30  ;;  %509 = vmax.xlane.f32.xlu1 %v508_v43  ;;  %488 = vmax.xlane.f32.xlu0 %v487_v35  ;;  %v391_v57 = vpop.permute.xlu1 %390  ;;  %v1892_v34 = vld [vmem:[%s1673_s22 + $0x60] sm:$0xff]  ;;  %v1895_v35 = vld [vmem:[%s1673_s22 + $0x68] sm:$0xff] }
  0xd6   : > { %v386_v58 = vpop.permute.xlu0 %385  ;;  %v440_v63 = vadd.f32 %v1704_v28, %v391_v57  ;;  %v441_v0 = vadd.f32 %v1706_v29, %v391_v57  ;;  %2478 = vst [vmem:[#allocation17_spill] sm:$0xff] %v1874_v15  ;;  %2479 = vst [vmem:[#allocation18_spill] sm:$0xff] %v1877_v16  ;;  %1197 = vmatpush3.bf16.msra.mxu0 %v1330_v42  ;;  %1265 = vmatpush3.bf16.msra.mxu1 %v1330_v42  ;;  %v1331_v42 = vld [vmem:[%s2401_s3 + $0x60] sm:$0xff]   ;;  %vm2444_vm9 = vcmp.gt.f32.partialorder %v1895_v35, -1e+29 }
  0xd7   : > { %2474 = vst [vmem:[#allocation13_spill] sm:$0xff] %v1848_v50  ;;  %v438_v1 = vadd.f32 %v1704_v28, %v386_v58  ;;  %v439_v3 = vadd.f32 %v1706_v29, %v386_v58  ;;  %v490_v10 = vmax.f32 %v1845_v49, %v1848_v50  ;;  %2483 = vst [vmem:[#allocation22_spill] sm:$0xff] %v1895_v35  ;;  %1198 = vmatprep.subr.bf16.mxu0 %v1331_v42 }
  0xd8   : > { %v1898_v37 = vadd.f32 %v440_v63, %v1867_v9  ;;  %1258 = vmatprep.subr.bf16.mxu1 %v1331_v42  ;;  %vm2120_vm2 = vmpackc.low %vm2442_vm0, %vm2444_vm9  ;;  %vm286_vm13 = vcmp.gt.f32.partialorder %v1892_v34, -1e+29 }
  0xd9   : > { %v1883_v19 = vadd.f32 %v438_v1, %v1857_v59  ;;  %v1886_v20 = vadd.f32 %v439_v3, %v1860_v62  ;;  %491 = vmax.xlane.f32.xlu1 %v490_v10  ;;  %512 = vmax.xlane.f32.xlu0 %v511_v14  ;;  %v361_v26 = vpop.permute.xlu1 %360  ;;  %v1907_v1 = vadd.f32 %v441_v0, %v1880_v18  ;;  %v1915_v14 = vld [vmem:[%s1673_s22 + $0x70] sm:$0xff] }
  0xda   : > { %v356_v31 = vpop.permute.xlu0 %355  ;;  %2484 = vst [vmem:[#allocation23_spill] sm:$0xff] %v1898_v37  ;;  %v428_v43 = vadd.f32 %v1704_v28, %v361_v26  ;;  %v429_v3 = vadd.f32 %v1706_v29, %v361_v26  ;;  %v493_v10 = vmax.f32 %v1874_v15, %v1877_v16  ;;  %2486 = vst [vmem:[#allocation25_spill] sm:$0xff] %v1915_v14  ;;  %v1927_v16 = vld [vmem:[%s1673_s22 + $0xe0] sm:$0xff]  ;;  %v1930_v15 = vld [vmem:[%s1673_s22 + $0xe8] sm:$0xff] }
  0xdb   : > { %2481 = vst [vmem:[#allocation20_spill] sm:$0xff] %v1883_v19  ;;  %2482 = vst [vmem:[#allocation21_spill] sm:$0xff] %v1886_v20  ;;  %v426_v57 = vadd.f32 %v1704_v28, %v356_v31  ;;  %v427_v58 = vadd.f32 %v1706_v29, %v356_v31  ;;  %v514_v63 = vmax.f32 %v1883_v19, %v1886_v20  ;;  %vm302_vm9 = vcmp.gt.f32.partialorder %v1927_v16, -1e+29 }
  0xdc   : > { %2485 = vst [vmem:[#allocation24_spill] sm:$0xff] %v1907_v1  ;;  %2488 = vst [vmem:[#allocation27_spill] sm:$0xff] %v1927_v16  ;;  %v1937_v19 = vadd.f32 %v428_v43, %v1915_v14  ;;  %v1947_v50 = vadd.f32 %v429_v3, %v1924_v48  ;;  %v1333_v3 = vld [vmem:[%s2401_s3 + $0x68] sm:$0xff]  }
  0xdd   : > { %v1918_v31 = vadd.f32 %v426_v57, %v1892_v34  ;;  %v1921_v0 = vadd.f32 %v427_v58, %v1895_v35  ;;  %515 = vmax.xlane.f32.xlu1 %v514_v63  ;;  %494 = vmax.xlane.f32.xlu0 %v493_v10  ;;  %v401_v26 = vpop.permute.xlu1 %400  ;;  %2489 = vst [vmem:[#allocation28_spill] sm:$0xff] %v1930_v15  ;;  %v2568_v34 = vld [vmem:[#allocation14_spill] sm:$0xff] }
  0xde   : > { %v396_v20 = vpop.permute.xlu0 %395  ;;  %v517_v58 = vmax.f32 %v1898_v37, %v1907_v1  ;;  %v444_v63 = vadd.f32 %v1704_v28, %v401_v26  ;;  %v445_v10 = vadd.f32 %v1706_v29, %v401_v26  ;;  %v1959_v37 = vld [vmem:[%s1673_s22 + $0xf0] sm:$0xff]  ;;  %v499_v26 = vmax.f32 %v1937_v19, %v1947_v50 }
  0xdf   : > { %v442_v25 = vadd.f32 %v1704_v28, %v396_v20  ;;  %v443_v57 = vadd.f32 %v1706_v29, %v396_v20  ;;  %v496_v36 = vmax.f32 %v1918_v31, %v1921_v0  ;;  %v1332_v20 = vld [vmem:[%s2401_s3 + $0x20] sm:$0xff]   ;;  %2490 = vst [vmem:[#allocation29_spill] sm:$0xff] %v1959_v37  ;;  %v1962_v28 = vld [vmem:[%s1673_s22 + $0xf8] sm:$0xff]  ;;  %s2350_s22 = scalar_lea.hbm %s2402_s4, %s1189_s6 }
  0xe0   : > { %2491 = vst [vmem:[#allocation30_spill] sm:$0xff] %v1962_v28  ;;  %1199 = vmatpush3.bf16.msra.mxu0 %v1332_v20  ;;  %1266 = vmatpush3.bf16.msra.mxu1 %v1332_v20  ;;  %v1338_v20 = vld [vmem:[%s2401_s3 + $0x38] sm:$0xff]  }
  0xe1   : > { %v1953_v43 = vadd.f32 %v442_v25, %v1927_v16  ;;  %v1956_v1 = vadd.f32 %v443_v57, %v1930_v15  ;;  %497 = vmax.xlane.f32.xlu1 %v496_v36  ;;  %518 = vmax.xlane.f32.xlu0 %v517_v58  ;;  %v1972_v25 = vadd.f32 %v444_v63, %v1959_v37  ;;  %v1334_v36 = vld [vmem:[%s2401_s3 + $0x28] sm:$0xff]   ;;  %v1335_v58 = vld [vmem:[%s2401_s3 + $0x70] sm:$0xff]  }
  0xe2   : > { %v1975_v57 = vadd.f32 %v445_v10, %v1962_v28  ;;  %1200 = vmatprep.subr.bf16.mxu0 %v1333_v3  ;;  %1259 = vmatprep.subr.bf16.mxu1 %v1333_v3  ;;  %v1336_v63 = vld [vmem:[%s2401_s3 + $0x30] sm:$0xff]   ;;  %v1337_v10 = vld [vmem:[%s2401_s3 + $0x78] sm:$0xff]  }
  0xe3   : > { %v520_v29 = vmax.f32 %v1953_v43, %v1956_v1 }
  0xe4   : > { %1201 = vmatpush3.bf16.msra.mxu0 %v1334_v36  ;;  %v523_v42 = vmax.f32 %v1972_v25, %v1975_v57  ;;  %1267 = vmatpush3.bf16.msra.mxu1 %v1334_v36 }
  0xe5   : > { %521 = vmax.xlane.f32.xlu1 %v520_v29  ;;  %500 = vmax.xlane.f32.xlu0 %v499_v26  ;;  %v2544_v29 = vld [vmem:[#allocation24_spill] sm:$0xff] }
  0xe6   : > { %1202 = vmatprep.subr.bf16.mxu0 %v1335_v58  ;;  %1260 = vmatprep.subr.bf16.mxu1 %v1335_v58 }
  0xe8   : > { %1203 = vmatpush3.bf16.msra.mxu0 %v1336_v63  ;;  %1268 = vmatpush3.bf16.msra.mxu1 %v1336_v63 }
  0xe9   : > { %524 = vmax.xlane.f32.xlu0 %v523_v42  ;;  %1204 = vmatprep.subr.bf16.mxu0 %v1337_v10 }
  0xea   : > { %1261 = vmatprep.subr.bf16.mxu1 %v1337_v10  ;;  %v2560_v10 = vld [vmem:[#allocation9_spill] sm:$0xff] }
  0xec   : > { %1205 = vmatpush3.bf16.msra.mxu0 %v1338_v20  ;;  %1269 = vmatpush3.bf16.msra.mxu1 %v1338_v20  ;;  %v2508_v20 = vmov 0 }
  0xed   : > { %v2509_v20 = vsel %vm2080_vm7, 4294967295, %v2508_v20  ;;  %vm2439_vm7 = vcmp.gt.f32.partialorder %v1867_v9, -1e+29 }
  0xee   : > { %2510 = vst [vmem:[#allocation31_spill] sm:$0xff] %v2509_v20  ;;  %v2514_v20 = vmov 0  ;;  %vm2110_vm1 = vmpackc.low %vm2439_vm7, %vm2441_vm14  ;;  %vm303_vm14 = vcmp.gt.f32.partialorder %v1930_v15, -1e+29 }
  0xef   : > { %v2515_v20 = vsel %vm2100_vm4, 4294967295, %v2514_v20  ;;  %v2518_v24 = vsel %vm2110_vm1, 4294967295, %v2517_v24  ;;  %vm2445_vm4 = vcmp.gt.f32.partialorder %v1915_v14, -1e+29  ;;  %vm2462_vm1 = vcmp.gt.f32.partialorder %v1962_v28, -1e+29 }
  0xf0   : > { %2516 = vst [vmem:[#allocation33_spill] sm:$0xff] %v2515_v20  ;;  %2519 = vst [vmem:[#allocation34_spill] sm:$0xff] %v2518_v24  ;;  %v2520_v20 = vmov 0  ;;  %v2523_v24 = vmov 0 }
  0xf1   : > { %v2521_v20 = vsel %vm2120_vm2, 4294967295, %v2520_v20  ;;  %vm2130_vm7 = vmpackc.low %vm2445_vm4, %vm286_vm13  ;;  %vm2463_vm2 = vcmp.gt.f32.partialorder %v1959_v37, -1e+29 }
  0xf2   : > { %2522 = vst [vmem:[#allocation35_spill] sm:$0xff] %v2521_v20  ;;  %v2524_v24 = vsel %vm2130_vm7, 4294967295, %v2523_v24  ;;  %vm2140_vm0 = vmpackc.low %vm2462_vm1, %vm303_vm14  ;;  %v2526_v20 = vmov 0  ;;  %vm2532_vm1 = vcmp.gt.f32.partialorder %v1709_v32, -1e+29 }
  0xf3   : > { %2525 = vst [vmem:[#allocation36_spill] sm:$0xff] %v2524_v24  ;;  %v2527_v20 = vsel %vm2140_vm0, 4294967295, %v2526_v20  ;;  %vm2150_vm4 = vmpackc.low %vm2463_vm2, %vm302_vm9  ;;  %v2529_v24 = vmov 0  ;;  %vm2536_vm2 = vcmp.gt.f32.partialorder %v1712_v33, -1e+29 }
  0xf4   : > { %2528 = vst [vmem:[#allocation37_spill] sm:$0xff] %v2527_v20  ;;  %v2530_v24 = vsel %vm2150_vm4, 4294967295, %v2529_v24 }
  0xf5   : > { %2531 = vst [vmem:[#allocation38_spill] sm:$0xff] %v2530_v24 }
 0x156   : > { %v480_v48 = vpop.xlane.xlu0 %479 }
 0x157   : > { %v526_v14 = vsub.f32 %v1725_v40, %v480_v48  ;;  %v527_v28 = vsub.f32 %v1728_v41, %v480_v48 }
 0x159   : > { %v558_v15 = vmul.f32 1.442695, %v526_v14  ;;  %v560_v18 = vmul.f32 1.442695, %v527_v28 }
 0x15a   : > { %v483_v20 = vpop.xlane.xlu1 %482  ;;  %v504_v9 = vpop.xlane.xlu0 %503 }
 0x15b   : > { %1339 = vpow2.f32 %v558_v15  ;;  %v528_v62 = vsub.f32 %v1749_v53, %v483_v20  ;;  %v529_v16 = vsub.f32 %v1752_v54, %v483_v20  ;;  %v542_v37 = vsub.f32 %v1737_v46, %v504_v9  ;;  %v2534_v20 = vld [vmem:[#allocation11_spill] sm:$0xff] }
 0x15c   : > { %1341 = vpow2.f32 %v560_v18  ;;  %v543_v59 = vsub.f32 %v1740_v47, %v504_v9 }
 0x15d   : > { %v562_v24 = vmul.f32 1.442695, %v528_v62  ;;  %v564_v35 = vmul.f32 1.442695, %v529_v16  ;;  %v590_v21 = vmul.f32 1.442695, %v542_v37 }
 0x15e   : > { %v592_v40 = vmul.f32 1.442695, %v543_v59  ;;  %v486_v12 = vpop.xlane.xlu1 %485  ;;  %v507_v41 = vpop.xlane.xlu0 %506 }
 0x15f   : > { %1343 = vpow2.f32 %v562_v24  ;;  %v530_v48 = vsub.f32 %v1787_v7, %v486_v12  ;;  %v531_v15 = vsub.f32 %v1790_v8, %v486_v12  ;;  %v544_v53 = vsub.f32 %v1778_v4, %v507_v41 }
 0x160   : > { %1345 = vpow2.f32 %v564_v35  ;;  %v545_v54 = vsub.f32 %v1781_v5, %v507_v41  ;;  %v2535_v41 = vld [vmem:[#allocation12_spill] sm:$0xff] }
 0x161   : > { %1347 = vpow2.f32 %v590_v21  ;;  %v566_v46 = vmul.f32 1.442695, %v530_v48  ;;  %v568_v18 = vmul.f32 1.442695, %v531_v15  ;;  %v594_v47 = vmul.f32 1.442695, %v544_v53 }
 0x162   : > { %1349 = vpow2.f32 %v592_v40  ;;  %v596_v62 = vmul.f32 1.442695, %v545_v54  ;;  %v510_v9 = vpop.xlane.xlu1 %509  ;;  %v489_v59 = vpop.xlane.xlu0 %488 }
 0x163   : > { %1351 = vpow2.f32 %v566_v46  ;;  %v546_v24 = vsub.f32 %v1816_v22, %v510_v9  ;;  %v547_v7 = vsub.f32 %v1819_v23, %v510_v9  ;;  %v532_v8 = vsub.f32 %v1799_v13, %v489_v59  ;;  %v2533_v23 = vld [vmem:[#allocation13_spill] sm:$0xff] }
 0x164   : > { %1353 = vpow2.f32 %v568_v18  ;;  %v533_v4 = vsub.f32 %v1805_v17, %v489_v59 }
 0x165   : > { %v2168_v12 = vpop.eup %1339  ;;  %1355 = vpow2.f32 %v594_v47  ;;  %v598_v5 = vmul.f32 1.442695, %v546_v24  ;;  %v600_v21 = vmul.f32 1.442695, %v547_v7  ;;  %v570_v16 = vmul.f32 1.442695, %v532_v8 }
 0x166   : > { %v1342_v35 = vpop.eup %1341  ;;  %1357 = vpow2.f32 %v596_v62  ;;  %v572_v37 = vmul.f32 1.442695, %v533_v4  ;;  %v492_v14 = vpop.xlane.xlu1 %491  ;;  %v622_v22 = vsel %vm2532_vm1, %v2168_v12, 0.0  ;;  %vm2537_vm1 = vcmp.gt.f32.partialorder %v1731_v44, -1e+29  ;;  %v2538_v7 = vld [vmem:[#allocation20_spill] sm:$0xff] }
 0x167   : > { %v513_v28 = vpop.xlane.xlu0 %512  ;;  %1359 = vpow2.f32 %v598_v5  ;;  %v534_v13 = vsub.f32 %v1845_v49, %v492_v14  ;;  %v535_v17 = vsub.f32 %v2533_v23, %v492_v14  ;;  %v623_v15 = vsel %vm2536_vm2, %v1342_v35, 0.0  ;;  %v2539_v8 = vld [vmem:[#allocation21_spill] sm:$0xff] }
 0x168   : > { %v548_v40 = vsub.f32 %v2534_v20, %v513_v28  ;;  %1361 = vpow2.f32 %v600_v21  ;;  %v549_v48 = vsub.f32 %v2535_v41, %v513_v28  ;;  %v654_v62 = vadd.f32 %v623_v15, %v622_v22  ;;  %v2540_v5 = vld [vmem:[#allocation17_spill] sm:$0xff] }
 0x169   : > { %v1344_v53 = vpop.eup %1343  ;;  %1363 = vpow2.f32 %v570_v16  ;;  %v574_v54 = vmul.f32 1.442695, %v534_v13  ;;  %v576_v46 = vmul.f32 1.442695, %v535_v17  ;;  %vm2542_vm2 = vcmp.gt.f32.partialorder %v1734_v45, -1e+29 }
 0x16a   : > { %v602_v18 = vmul.f32 1.442695, %v548_v40  ;;  %v1346_v32 = vpop.eup %1345  ;;  %1365 = vpow2.f32 %v572_v37  ;;  %v604_v47 = vmul.f32 1.442695, %v549_v48  ;;  %v516_v49 = vpop.xlane.xlu1 %515  ;;  %v624_v59 = vsel %vm2537_vm1, %v1344_v53, 0.0  ;;  %655 = vadd.xlane.f32.xlu1 %v654_v62  ;;  %v2541_v37 = vld [vmem:[#allocation18_spill] sm:$0xff] }
 0x16b   : > { %v495_v9 = vpop.xlane.xlu0 %494  ;;  %v2181_v24 = vpop.eup %1347  ;;  %1367 = vpow2.f32 %v574_v54  ;;  %v550_v33 = vsub.f32 %v2538_v7, %v516_v49  ;;  %v551_v4 = vsub.f32 %v2539_v8, %v516_v49  ;;  %v1135_v28 = vpack.c.bf16 %v1346_v32, %v1342_v35 }
 0x16c   : > { %v536_v21 = vsub.f32 %v2540_v5, %v495_v9  ;;  %v2186_v16 = vpop.eup %1349  ;;  %1369 = vpow2.f32 %v576_v46  ;;  %v537_v14 = vsub.f32 %v2541_v37, %v495_v9  ;;  %v625_v44 = vsel %vm2542_vm2, %v1346_v32, 0.0 }
 0x16d   : > { %v2191_v22 = vpop.eup %1351  ;;  %1371 = vpow2.f32 %v602_v18  ;;  %v606_v13 = vmul.f32 1.442695, %v550_v33  ;;  %v608_v23 = vmul.f32 1.442695, %v551_v4  ;;  %1136 = vmatprep.mubr.msk.bf16.mxu0 %vm2001_vm3, %v1135_v28  ;;  %v657_v41 = vadd.f32 %v625_v44, %v624_v59  ;;  %v2543_v18 = vld [vmem:[#allocation23_spill] sm:$0xff] }
 0x16e   : > { %v578_v17 = vmul.f32 1.442695, %v536_v21  ;;  %v1354_v20 = vpop.eup %1353  ;;  %1373 = vpow2.f32 %v604_v47  ;;  %v580_v40 = vmul.f32 1.442695, %v537_v14  ;;  %v1138_v48 = vpack.c.bf16 %v1344_v53, %v2168_v12  ;;  %v498_v15 = vpop.xlane.xlu1 %497 }
 0x16f   : > { %v519_v35 = vpop.xlane.xlu0 %518  ;;  %v2196_v54 = vpop.eup %1355  ;;  %1375 = vpow2.f32 %v606_v13  ;;  %v538_v45 = vsub.f32 %v1918_v31, %v498_v15  ;;  %v539_v46 = vsub.f32 %v1921_v0, %v498_v15  ;;  %658 = vadd.xlane.f32.xlu0 %v657_v41  ;;  %vm2545_vm3 = vcmp.gt.f32.partialorder %v1763_v60, -1e+29 }
 0x170   : > { %v552_v32 = vsub.f32 %v2543_v18, %v519_v35  ;;  %v2201_v62 = vpop.eup %1357  ;;  %1377 = vpow2.f32 %v608_v23  ;;  %1139 = vmatmul.mubr.msk.bf16.vlgmr.msra.gmra.mrb[0].mxu0 %vm2010_vm5, %v1138_v48  ;;  %v553_v12 = vsub.f32 %v2544_v29, %v519_v35  ;;  %v1162_v53 = vpack.c.bf16 %v2196_v54, %v2181_v24 }
 0x171   : > { %v626_v31 = vsel %vm2545_vm3, %v2191_v22, 0.0  ;;  %v2211_v47 = vpop.eup %1359  ;;  %1379 = vpow2.f32 %v578_v17  ;;  %v582_v0 = vmul.f32 1.442695, %v538_v45  ;;  %v584_v49 = vmul.f32 1.442695, %v539_v46 }
 0x172   : > { %v610_v9 = vmul.f32 1.442695, %v552_v32  ;;  %v2213_v59 = vpop.eup %1361  ;;  %1381 = vpow2.f32 %v580_v40  ;;  %v612_v3 = vmul.f32 1.442695, %v553_v12  ;;  %v1159_v7 = vpack.c.bf16 %v2201_v62, %v2186_v16  ;;  %v522_v8 = vpop.xlane.xlu1 %521 }
 0x173   : > { %vm2546_vm5 = vcmp.gt.f32.partialorder %v1766_v61, -1e+29  ;;  %v501_v4 = vpop.xlane.xlu0 %500  ;;  %v1364_v60 = vpop.eup %1363  ;;  %1383 = vpow2.f32 %v582_v0  ;;  %v554_v21 = vsub.f32 %v1953_v43, %v522_v8  ;;  %v555_v37 = vsub.f32 %v1956_v1, %v522_v8 }
 0x174   : > { %v627_v33 = vsel %vm2546_vm5, %v1354_v20, 0.0  ;;  %v1366_v14 = vpop.eup %1365  ;;  %1385 = vpow2.f32 %v584_v49  ;;  %1160 = vmatprep.mubr.msk.bf16.mxu1 %vm2020_vm8, %v1159_v7  ;;  %v540_v28 = vsub.f32 %v1937_v19, %v501_v4  ;;  %v541_v44 = vsub.f32 %v1947_v50, %v501_v4  ;;  %v2566_v7 = vld [vmem:[#allocation10_spill] sm:$0xff] }
 0x175   : > { %v660_v5 = vadd.f32 %v627_v33, %v626_v31  ;;  %vm2547_vm1 = vcmp.gt.f32.partialorder %v1773_v2, -1e+29  ;;  %v2227_v13 = vpop.eup %1367  ;;  %1387 = vpow2.f32 %v610_v9  ;;  %1163 = vmatmul.mubr.msk.bf16.vlgmr.msra.gmra.mrb[0].mxu1 %vm2030_vm11, %v1162_v53  ;;  %v614_v1 = vmul.f32 1.442695, %v554_v21  ;;  %v2558_v31 = vld [vmem:[#allocation8_spill] sm:$0xff]  ;;  %v2570_v21 = vld [vmem:[#allocation15_spill] sm:$0xff] }
 0x176   : > { %v628_v61 = vsel %vm2547_vm1, %v1364_v60, 0.0  ;;  %v616_v43 = vmul.f32 1.442695, %v555_v37  ;;  %v1141_v23 = vpack.c.bf16 %v1366_v14, %v1354_v20  ;;  %v1370_v17 = vpop.eup %1369  ;;  %1389 = vpow2.f32 %v612_v3  ;;  %v2564_v3 = vld [vmem:[#allocation22_spill] sm:$0xff] }
 0x177   : > { %661 = vadd.xlane.f32.xlu1 %v660_v5  ;;  %v586_v26 = vmul.f32 1.442695, %v540_v28  ;;  %v588_v40 = vmul.f32 1.442695, %v541_v44  ;;  %vm2548_vm8 = vcmp.gt.f32.partialorder %v1784_v6, -1e+29  ;;  %v525_v19 = vpop.xlane.xlu0 %524  ;;  %v1372_v2 = vpop.eup %1371  ;;  %1391 = vpow2.f32 %v614_v1 }
 0x178   : > { %v629_v50 = vsel %vm2548_vm8, %v1366_v14, 0.0  ;;  %1142 = vmatprep.mubr.msk.bf16.mxu0 %vm2041_vm15, %v1141_v23  ;;  %v1144_v36 = vpack.c.bf16 %v1364_v60, %v2191_v22  ;;  %v556_v48 = vsub.f32 %v1972_v25, %v525_v19  ;;  %v1374_v15 = vpop.eup %1373  ;;  %1393 = vpow2.f32 %v616_v43  ;;  %v2572_v28 = vld [vmem:[#allocation32_spill] sm:$0xff]  ;;  %v2576_v43 = vld [vmem:[#allocation19_spill] sm:$0xff] }
 0x179   : > { %v663_v41 = vadd.f32 %v629_v50, %v628_v61  ;;  %v557_v20 = vsub.f32 %v1975_v57, %v525_v19  ;;  %v1168_v35 = vpack.c.bf16 %v1372_v2, %v2211_v47  ;;  %vm2549_vm11 = vcmp.gt.f32.partialorder %v1825_v27, -1e+29  ;;  %v2242_v45 = vpop.eup %1375 }
 0x17a   : > { %v630_v6 = vsel %vm2549_vm11, %v2227_v13, 0.0  ;;  %1395 = vpow2.f32 %v586_v26  ;;  %1145 = vmatmul.mubr.msk.bf16.gmra.mrb[4].mxu0 %vm2050_vm10, %v1144_v36  ;;  %v618_v58 = vmul.f32 1.442695, %v556_v48  ;;  %v1165_v25 = vpack.c.bf16 %v1374_v15, %v2213_v59  ;;  %v1378_v57 = vpop.eup %1377 }
 0x17b   : > { %664 = vadd.xlane.f32.xlu0 %v663_v41  ;;  %vm2550_vm15 = vcmp.gt.f32.partialorder %v1828_v30, -1e+29  ;;  %1397 = vpow2.f32 %v588_v40  ;;  %v620_v46 = vmul.f32 1.442695, %v557_v20  ;;  %vm2551_vm2 = vcmp.gt.f32.partialorder %v1719_v38, -1e+29  ;;  %v1380_v32 = vpop.eup %1379 }
 0x17c   : > { %v631_v22 = vsel %vm2550_vm15, %v1370_v17, 0.0  ;;  %v638_v27 = vsel %vm2551_vm2, %v2181_v24, 0.0  ;;  %1399 = vpow2.f32 %v618_v58  ;;  %1166 = vmatprep.mubr.msk.bf16.mxu1 %vm2060_vm12, %v1165_v25  ;;  %vm2552_vm10 = vcmp.gt.f32.partialorder %v1722_v39, -1e+29  ;;  %v1382_v12 = vpop.eup %1381  ;;  %v2586_v25 = vld [vmem:[#allocation26_spill] sm:$0xff] }
 0x17d   : > { %v666_v18 = vadd.f32 %v631_v22, %v630_v6  ;;  %v639_v42 = vsel %vm2552_vm10, %v2186_v16, 0.0  ;;  %vm2553_vm3 = vcmp.gt.f32.partialorder %v1755_v55, -1e+29  ;;  %vm2554_vm5 = vcmp.gt.f32.partialorder %v1758_v56, -1e+29  ;;  %v1384_v53 = vpop.eup %1383  ;;  %1169 = vmatmul.mubr.msk.bf16.gmra.mrb[4].mxu1 %vm2070_vm6, %v1168_v35 }
 0x17e   : > { %v640_v30 = vsel %vm2553_vm3, %v2196_v54, 0.0  ;;  %v641_v29 = vsel %vm2554_vm5, %v2201_v62, 0.0  ;;  %1401 = vpow2.f32 %v620_v46  ;;  %vm2555_vm1 = vcmp.gt.f32.partialorder %v1851_v51, -1e+29  ;;  %v1386_v54 = vpop.eup %1385 }
 0x17f   : > { %667 = vadd.xlane.f32.xlu1 %v666_v18  ;;  %v632_v38 = vsel %vm2555_vm1, %v1380_v32, 0.0  ;;  %v1150_v63 = vpack.c.bf16 %v1380_v32, %v2227_v13  ;;  %v678_v24 = vadd.f32 %v639_v42, %v638_v27  ;;  %v1147_v39 = vpack.c.bf16 %v1382_v12, %v1370_v17  ;;  %v1388_v9 = vpop.eup %1387  ;;  %v2574_v13 = vld [vmem:[#allocation16_spill] sm:$0xff]  ;;  %v2588_v27 = vld [vmem:[#allocation29_spill] sm:$0xff]  ;;  %v2590_v42 = vld [vmem:[#allocation35_spill] sm:$0xff] }
 0x180   : > { %vm2556_vm12 = vcmp.gt.f32.partialorder %v1854_v52, -1e+29  ;;  %v681_v16 = vadd.f32 %v641_v29, %v640_v30  ;;  %vm2557_vm8 = vcmp.gt.f32.partialorder %v1793_v11, -1e+29  ;;  %v634_v51 = vsel %vm286_vm13, %v1384_v53, 0.0  ;;  %v2562_v52 = vld [vmem:[#allocation31_spill] sm:$0xff]  ;;  %v1390_v4 = vpop.eup %1389 }
 0x181   : > { %v633_v55 = vsel %vm2556_vm12, %v1382_v12, 0.0  ;;  %v642_v56 = vsel %vm2557_vm8, %v2211_v47, 0.0  ;;  %vm2559_vm11 = vcmp.gt.f32.partialorder %v2558_v31, -1e+29  ;;  %vm2561_vm6 = vcmp.gt.f32.partialorder %v2560_v10, -1e+29  ;;  %v1392_v14 = vpop.eup %1391 }
 0x182   : > { %v669_v62 = vadd.f32 %v633_v55, %v632_v38  ;;  %v643_v0 = vsel %vm2559_vm11, %v2213_v59, 0.0  ;;  %v644_v49 = vsel %vm2561_vm6, %v1372_v2, 0.0  ;;  %vm2563_vm15 = vnez %v2562_v52  ;;  %v1394_v17 = vpop.eup %1393  ;;  %v2579_v2 = vld [vmem:[#allocation33_spill] sm:$0xff]  ;;  %v2592_v29 = vld [vmem:[#allocation30_spill] sm:$0xff] }
 0x183   : > { %1148 = vmatprep.mubr.msk.bf16.mxu0 %vm2563_vm15, %v1147_v39  ;;  %vm2565_vm2 = vcmp.gt.f32.partialorder %v2564_v3, -1e+29  ;;  %v684_v47 = vadd.f32 %v643_v0, %v642_v56  ;;  %vm2567_vm10 = vcmp.gt.f32.partialorder %v2566_v7, -1e+29  ;;  %vm2569_vm13 = vcmp.gt.f32.partialorder %v2568_v34, -1e+29 }
 0x184   : > { %v635_v11 = vsel %vm2565_vm2, %v1386_v54, 0.0  ;;  %v645_v33 = vsel %vm2567_vm10, %v1374_v15, 0.0  ;;  %v646_v8 = vsel %vm2569_vm13, %v2242_v45, 0.0  ;;  %670 = vadd.xlane.f32.xlu0 %v669_v62  ;;  %v1174_v59 = vpack.c.bf16 %v1388_v9, %v2242_v45  ;;  %v1396_v19 = vpop.eup %1395  ;;  %v2582_v15 = vld [vmem:[#allocation25_spill] sm:$0xff]  ;;  %v2584_v45 = vld [vmem:[#allocation34_spill] sm:$0xff] }
 0x185   : > { %v672_v60 = vadd.f32 %v635_v11, %v634_v51  ;;  %v687_v5 = vadd.f32 %v645_v33, %v644_v49  ;;  %vm2571_vm3 = vcmp.gt.f32.partialorder %v2570_v21, -1e+29  ;;  %vm2573_vm5 = vnez %v2572_v28  ;;  %v1398_v48 = vpop.eup %1397 }
 0x186   : > { %v647_v37 = vsel %vm2571_vm3, %v1378_v57, 0.0  ;;  %1151 = vmatmul.mubr.msk.bf16.gmra.mrb[8].mxu0 %vm2573_vm5, %v1150_v63  ;;  %v1171_v44 = vpack.c.bf16 %v1390_v4, %v1378_v57  ;;  %vm2575_vm1 = vcmp.gt.f32.partialorder %v2574_v13, -1e+29  ;;  %vm2577_vm12 = vcmp.gt.f32.partialorder %v2576_v43, -1e+29  ;;  %v1400_v6 = vpop.eup %1399 }
 0x187   : > { %v690_v61 = vadd.f32 %v647_v37, %v646_v8  ;;  %v648_v1 = vsel %vm2575_vm1, %v1388_v9, 0.0  ;;  %v649_v23 = vsel %vm2577_vm12, %v1390_v4, 0.0  ;;  %673 = vadd.xlane.f32.xlu1 %v672_v60  ;;  %v650_v50 = vsel %vm302_vm9, %v1392_v14, 0.0 }
 0x188   : > { %v693_v26 = vadd.f32 %v649_v23, %v648_v1  ;;  %vm2580_vm8 = vnez %v2579_v2  ;;  %v651_v36 = vsel %vm303_vm14, %v1394_v17, 0.0  ;;  %vm2583_vm11 = vcmp.gt.f32.partialorder %v2582_v15, -1e+29  ;;  %v1402_v46 = vpop.eup %1401 }
 0x189   : > { %1172 = vmatprep.mubr.msk.bf16.mxu1 %vm2580_vm8, %v1171_v44  ;;  %v636_v20 = vsel %vm2583_vm11, %v1396_v19, 0.0  ;;  %v696_v35 = vadd.f32 %v651_v36, %v650_v50  ;;  %vm2585_vm6 = vnez %v2584_v45  ;;  %v1153_v58 = vpack.c.bf16 %v1398_v48, %v1386_v54 }
 0x18a   : > { %1175 = vmatmul.mubr.msk.bf16.gmra.mrb[8].mxu1 %vm2585_vm6, %v1174_v59  ;;  %vm2587_vm15 = vcmp.gt.f32.partialorder %v2586_v25, -1e+29  ;;  %v1156_v57 = vpack.c.bf16 %v1396_v19, %v1384_v53  ;;  %vm2589_vm9 = vcmp.gt.f32.partialorder %v2588_v27, -1e+29  ;;  %vm2591_vm14 = vnez %v2590_v42 }
 0x18b   : > { %v637_v22 = vsel %vm2587_vm15, %v1398_v48, 0.0  ;;  %679 = vadd.xlane.f32.xlu1 %v678_v24  ;;  %v652_v32 = vsel %vm2589_vm9, %v1400_v6, 0.0  ;;  %1154 = vmatprep.mubr.msk.bf16.mxu0 %vm2591_vm14, %v1153_v58  ;;  %v1177_v30 = vpack.c.bf16 %v1402_v46, %v1394_v17  ;;  %vm2593_vm2 = vcmp.gt.f32.partialorder %v2592_v29, -1e+29 }
 0x18c   : > { %v675_v18 = vadd.f32 %v637_v22, %v636_v20  ;;  %v653_v12 = vsel %vm2593_vm2, %v1402_v46, 0.0  ;;  %v1180_v53 = vpack.c.bf16 %v1400_v6, %v1392_v14 }
 0x18d   : > { %v699_v38 = vadd.f32 %v653_v12, %v652_v32  ;;  %1178 = vmatprep.mubr.msk.bf16.mxu1 %vm2140_vm0, %v1177_v30 }
 0x18e   : > { %676 = vadd.xlane.f32.xlu0 %v675_v18  ;;  %1157 = vmatmul.mubr.msk.bf16.gmra.mrb[12].mxu0 %vm2130_vm7, %v1156_v57 }
 0x18f   : > { %685 = vadd.xlane.f32.xlu1 %v684_v47 }
 0x192   : > { %682 = vadd.xlane.f32.xlu0 %v681_v16  ;;  %1181 = vmatmul.mubr.msk.bf16.gmra.mrb[12].mxu1 %vm2150_vm4, %v1180_v53 }
 0x193   : > { %691 = vadd.xlane.f32.xlu1 %v690_v61 }
 0x196   : > { %688 = vadd.xlane.f32.xlu0 %v687_v5 }
 0x197   : > { %697 = vadd.xlane.f32.xlu1 %v696_v35 }
 0x19a   : > { %694 = vadd.xlane.f32.xlu0 %v693_v26 }
 0x19e   : > { %700 = vadd.xlane.f32.xlu0 %v699_v38 }
 0x1f7   : > { %v656_v55 = vpop.xlane.xlu1 %655 }
 0x1f8   : > { %v943_v16 = vmax.f32 %v656_v55, 1e-30 }
 0x1fa   : > { %1403 = vrcp.f32 %v943_v16 }
 0x1fc   : > { %v659_v56 = vpop.xlane.xlu0 %658 }
 0x1fd   : > { %v944_v49 = vmax.f32 %v659_v56, 1e-30 }
 0x1ff   : > { %1405 = vrcp.f32 %v944_v49 }
 0x204   : > { %v662_v54 = vpop.xlane.xlu1 %661  ;;  %v1404_v21 = vpop.eup %1403 }
 0x205   : > { %v945_v47 = vmax.f32 %v662_v54, 1e-30 }
 0x208   : > { %v665_v62 = vpop.xlane.xlu0 %664 }
 0x209   : > { %v946_v33 = vmax.f32 %v665_v62, 1e-30  ;;  %v1406_v61 = vpop.eup %1405 }
 0x20c   : > { %v668_v51 = vpop.xlane.xlu1 %667 }
 0x20d   : > { %v947_v1 = vmax.f32 %v668_v51, 1e-30 }
 0x211   : > { %v671_v31 = vpop.xlane.xlu0 %670 }
 0x212   : > { %v948_v19 = vmax.f32 %v671_v31, 1e-30 }
 0x214   : > { %v2322_v0 = vpop.xlane.xlu1 %673 }
 0x215   : > { %v949_v30 = vmax.f32 %v2322_v0, 1e-30 }
 0x218   : > { %v680_v9 = vpop.xlane.xlu1 %679 }
 0x219   : > { %v951_v3 = vmax.f32 %v680_v9, 1e-30 }
 0x21b   : > { %v2324_v10 = vpop.xlane.xlu0 %676  ;;  %1407 = vrcp.f32 %v951_v3 }
 0x21c   : > { %v686_v7 = vpop.xlane.xlu1 %685  ;;  %v950_v24 = vmax.f32 %v2324_v10, 1e-30 }
 0x21d   : > { %v953_v59 = vmax.f32 %v686_v7, 1e-30 }
 0x21f   : > { %v683_v52 = vpop.xlane.xlu0 %682 }
 0x220   : > { %v952_v11 = vmax.f32 %v683_v52, 1e-30  ;;  %v692_v17 = vpop.xlane.xlu1 %691 }
 0x221   : > { %v955_v35 = vmax.f32 %v692_v17, 1e-30 }
 0x222   : > { %1409 = vrcp.f32 %v952_v11 }
 0x223   : > { %v689_v8 = vpop.xlane.xlu0 %688  ;;  %1411 = vrcp.f32 %v945_v47 }
 0x224   : > { %1413 = vrcp.f32 %v946_v33  ;;  %v954_v14 = vmax.f32 %v689_v8, 1e-30  ;;  %v698_v12 = vpop.xlane.xlu1 %697 }
 0x225   : > { %1415 = vrcp.f32 %v953_v59  ;;  %v1408_v50 = vpop.eup %1407  ;;  %v957_v0 = vmax.f32 %v698_v12, 1e-30 }
 0x226   : > { %1417 = vrcp.f32 %v954_v14 }
 0x227   : > { %v695_v41 = vpop.xlane.xlu0 %694  ;;  %1419 = vrcp.f32 %v947_v1 }
 0x228   : > { %1421 = vrcp.f32 %v948_v19  ;;  %v956_v57 = vmax.f32 %v695_v41, 1e-30 }
 0x229   : > { %1423 = vrcp.f32 %v955_v35 }
 0x22a   : > { %1425 = vrcp.f32 %v956_v57 }
 0x22b   : > { %v701_v56 = vpop.xlane.xlu0 %700  ;;  %1427 = vrcp.f32 %v949_v30 }
 0x22c   : > { %v1410_v20 = vpop.eup %1409  ;;  %1429 = vrcp.f32 %v950_v24  ;;  %v958_v10 = vmax.f32 %v701_v56, 1e-30 }
 0x22d   : > { %v1412_v22 = vpop.eup %1411  ;;  %1431 = vrcp.f32 %v957_v0 }
 0x22e   : > { %v1414_v42 = vpop.eup %1413  ;;  %1433 = vrcp.f32 %v958_v10 }
 0x22f   : > { %v1416_v53 = vpop.eup %1415 }
 0x230   : > { %v1418_v31 = vpop.eup %1417 }
 0x231   : > { %v1420_v3 = vpop.eup %1419 }
 0x243   : > { %v1206_v34 = vpop.f32.mrb[0].mxu0 }
 0x244   : > { %v1207_v4 = vpop.f32.mrb[1].mxu0 }
 0x245   : > { %v1208_v60 = vadd.f32 %v1207_v4, %v1206_v34  ;;  %v1209_v5 = vpop.f32.mrb[2].mxu0  ;;  %v1422_v34 = vpop.eup %1421 }
 0x246   : > { %v1210_v37 = vpop.f32.mrb[3].mxu0 }
 0x247   : > { %v975_v28 = vmul.f32 %v1404_v21, %v1208_v60  ;;  %v1211_v44 = vadd.f32 %v1210_v37, %v1209_v5  ;;  %v1424_v5 = vpop.eup %1423 }
 0x248   : > { %v1230_v13 = vpop.f32.mrb[0].mxu1 }
 0x249   : > { %991 = vst [vmem:[%s2327_s5] sm:$0xff] %v975_v28  ;;  %v976_v43 = vmul.f32 %v1406_v61, %v1211_v44  ;;  %v1231_v23 = vpop.f32.mrb[1].mxu1  ;;  %v1426_v44 = vpop.eup %1425 }
 0x24a   : > { %v1232_v26 = vadd.f32 %v1231_v23, %v1230_v13  ;;  %v1233_v40 = vpop.f32.mrb[2].mxu1  ;;  %v1428_v23 = vpop.eup %1427 }
 0x24b   : > { %992 = vst [vmem:[%s2327_s5 + $0x8] sm:$0xff] %v976_v43  ;;  %v1234_v2 = vpop.f32.mrb[3].mxu1  ;;  %v1430_v19 = vpop.eup %1429 }
 0x24c   : > { %v983_v36 = vmul.f32 %v1408_v50, %v1232_v26  ;;  %v1235_v48 = vadd.f32 %v1234_v2, %v1233_v40 }
 0x24d   : > { %v1212_v15 = vpop.f32.mrb[4].mxu0 }
 0x24e   : > { %v1213_v6 = vpop.f32.mrb[5].mxu0  ;;  %999 = vst [vmem:[%s2327_s5 + $0x40] sm:$0xff] %v983_v36  ;;  %v984_v45 = vmul.f32 %v1410_v20, %v1235_v48 }
 0x24f   : > { %v1214_v58 = vadd.f32 %v1213_v6, %v1212_v15  ;;  %v1215_v25 = vpop.f32.mrb[6].mxu0  ;;  %v1432_v15 = vpop.eup %1431 }
 0x250   : > { %v1216_v46 = vpop.f32.mrb[7].mxu0  ;;  %1000 = vst [vmem:[%s2327_s5 + $0x48] sm:$0xff] %v984_v45  ;;  %v1236_v32 = vpop.f32.mrb[4].mxu1 }
 0x251   : > { %v977_v18 = vmul.f32 %v1412_v22, %v1214_v58  ;;  %v1217_v27 = vadd.f32 %v1216_v46, %v1215_v25  ;;  %v1237_v29 = vpop.f32.mrb[5].mxu1  ;;  %v1434_v45 = vpop.eup %1433 }
 0x252   : > { %v1238_v63 = vadd.f32 %v1237_v29, %v1236_v32  ;;  %v1239_v39 = vpop.f32.mrb[6].mxu1 }
 0x253   : > { %993 = vst [vmem:[%s2327_s5 + $0x10] sm:$0xff] %v977_v18  ;;  %v978_v38 = vmul.f32 %v1414_v42, %v1217_v27  ;;  %v1240_v55 = vpop.f32.mrb[7].mxu1 }
 0x254   : > { %v985_v54 = vmul.f32 %v1416_v53, %v1238_v63  ;;  %v1241_v62 = vadd.f32 %v1240_v55, %v1239_v39 }
 0x255   : > { %994 = vst [vmem:[%s2327_s5 + $0x18] sm:$0xff] %v978_v38 }
 0x256   : > { %1001 = vst [vmem:[%s2327_s5 + $0x50] sm:$0xff] %v985_v54  ;;  %v986_v49 = vmul.f32 %v1418_v31, %v1241_v62 }
 0x258   : > { %1002 = vst [vmem:[%s2327_s5 + $0x58] sm:$0xff] %v986_v49 }
 0x259   : > { %v1218_v51 = vpop.f32.mrb[8].mxu0 }
 0x25a   : > { %v1219_v16 = vpop.f32.mrb[9].mxu0 }
 0x25b   : > { %v1220_v9 = vadd.f32 %v1219_v16, %v1218_v51  ;;  %v1221_v52 = vpop.f32.mrb[10].mxu0 }
 0x25c   : > { %v1222_v11 = vpop.f32.mrb[11].mxu0 }
 0x25d   : > { %v979_v47 = vmul.f32 %v1420_v3, %v1220_v9  ;;  %v1223_v7 = vadd.f32 %v1222_v11, %v1221_v52  ;;  %v1242_v33 = vpop.f32.mrb[8].mxu1 }
 0x25e   : > { %v1243_v8 = vpop.f32.mrb[9].mxu1 }
 0x25f   : > { %995 = vst [vmem:[%s2327_s5 + $0x20] sm:$0xff] %v979_v47  ;;  %v980_v4 = vmul.f32 %v1422_v34, %v1223_v7  ;;  %v1244_v59 = vadd.f32 %v1243_v8, %v1242_v33  ;;  %v1245_v60 = vpop.f32.mrb[10].mxu1 }
 0x260   : > { %v1246_v21 = vpop.f32.mrb[11].mxu1 }
 0x261   : > { %996 = vst [vmem:[%s2327_s5 + $0x28] sm:$0xff] %v980_v4  ;;  %v987_v37 = vmul.f32 %v1424_v5, %v1244_v59  ;;  %v1247_v14 = vadd.f32 %v1246_v21, %v1245_v60  ;;  %v1224_v28 = vpop.f32.mrb[12].mxu0 }
 0x262   : > { %v1225_v61 = vpop.f32.mrb[13].mxu0 }
 0x263   : > { %1003 = vst [vmem:[%s2327_s5 + $0x60] sm:$0xff] %v987_v37  ;;  %v988_v13 = vmul.f32 %v1426_v44, %v1247_v14  ;;  %v1226_v1 = vadd.f32 %v1225_v61, %v1224_v28  ;;  %v1227_v43 = vpop.f32.mrb[14].mxu0 }
 0x264   : > { %v1228_v17 = vpop.f32.mrb[15].mxu0 }
 0x265   : > { %1004 = vst [vmem:[%s2327_s5 + $0x68] sm:$0xff] %v988_v13  ;;  %v981_v26 = vmul.f32 %v1428_v23, %v1226_v1  ;;  %v1229_v40 = vadd.f32 %v1228_v17, %v1227_v43  ;;  %v1248_v50 = vpop.f32.mrb[12].mxu1 }
 0x266   : > { %v1249_v2 = vpop.f32.mrb[13].mxu1 }
 0x267   : > { %997 = vst [vmem:[%s2327_s5 + $0x30] sm:$0xff] %v981_v26  ;;  %v982_v41 = vmul.f32 %v1430_v19, %v1229_v40  ;;  %v1250_v36 = vadd.f32 %v1249_v2, %v1248_v50  ;;  %v1251_v48 = vpop.f32.mrb[14].mxu1 }
 0x268   : > { %v1252_v20 = vpop.f32.mrb[15].mxu1 }
 0x269   : > { %998 = vst [vmem:[%s2327_s5 + $0x38] sm:$0xff] %v982_v41  ;;  %v989_v35 = vmul.f32 %v1432_v15, %v1250_v36  ;;  %v1253_v6 = vadd.f32 %v1252_v20, %v1251_v48 }
 0x26b   : > { %1005 = vst [vmem:[%s2327_s5 + $0x70] sm:$0xff] %v989_v35  ;;  %v990_v58 = vmul.f32 %v1434_v45, %v1253_v6 }
 0x26d   : > { %1006 = vst [vmem:[%s2327_s5 + $0x78] sm:$0xff] %v990_v58 }
 0x26e   : > { %1478 = shalt.err (!%p1475_p4)
}
 0x26f   : > { %s1479_s12 = scalar_lea.hbm %s2350_s22, 2048  ;;  %s1483_s25 = scalar_lea.hbm %s2402_s4, 4096 }
 0x270   : > { %p1480_p5 = scmp.ne.s32.totalorder %s2350_s22, %s1479_s12  ;;  %p1484_p1 = scmp.lt.u32.totalorder %s2350_s22, %s2402_s4 }
 0x271   : > { %p1485_p3 = scmp.lt.u32.totalorder %s1483_s25, %s1479_s12  ;;  %p1487_p6 = scmp.lt.u32.totalorder %s1479_s12, %s2350_s22 }
 0x272   : > { %p1481_p7 = pnand %p1480_p5, %p2597_p12 }
 0x273   : > { %p1486_p11 = por %p1485_p3, %p1484_p1 }
 0x274   : > { %p1482_p9 = pneg %p1481_p7 }
 0x275   : > { %p1488_p13 = por %p1487_p6, %p1486_p11 }
 0x277   : > { %p1489_p8 = pnand %p1488_p13, %p1482_p9 }
 0x279   : > { %1492 = shalt.err (!%p1489_p8)
}
 0x27a   : > { %s1538_s5 = smov 128   ;;  %s1539_s6 = smov 8  }
 0x27b   : > { %1272 = dma.vmem_to_hbm [thread:$0]  (%p2597_p12), %s2352_s7, 2048, %s2350_s22, %s1008_s19, %s1538_s5, %s1538_s5, %s1539_s6  }
 0x27c PF: > { %s1036_s9 = sand.u32 1, %s1519_s15   ;;  %p2598_p10 = scmp.ne.s32.totalorder %s2467_s28, 0 }
 0x27d   : > { %p2599_p0 = scmp.ge.s32.totalorder %s1531_s18, 2  ;;  %s1037_s14 = scalar_lea.sflag [#allocation4], %s1036_s9 }
 0x27f   : > { %p1279_p2 = pnand %p2599_p0, %p2598_p10 }
 0x281   : > { %1514 = dma.done.wait (!%p1279_p2), %s1037_s14, 2048  }
 0x282   : > { %1516 = vsyncadd (!%p1279_p2), %s1037_s14, 4294965248  ;;  %p17_p4 = scmp.ge.s32.totalorder %s1590_s21, 4   ;;  %s2600_s15 = smov %s1523_s16 }
 0x283   : > { %s2601_s16 = smov %s1527_s17  ;;  %s2602_s17 = smov %s1602_s24 }
 0x284   : > { %s2603_s18 = smov %s1590_s21  ;;  %19 = sbr.rel (!%p17_p4) target bundleno = 5 (0x5), region = 84 }
 0x28b   :  { %1042 = vsyncpa [#allocation3], 1 }
 0x28c   :  { %1044 = vsyncpa [#allocation3 + $0x1], 1 }
 0x28d   :  { %1045 = vsyncpa [#allocation4], 1 }
 0x28e   :  { %1047 = vsyncpa [#allocation4 + $0x1], 1 }

</bundles_post_ra>
